<compile_context>
chip_gen: v7x
topology: tpu7x:2x2x1
jax: 0.10.0
libtpu: 0.0.40
codegen_flags: <defaults>
</compile_context>

<pallas_src>
import jax
import jax.numpy as jnp
from jax.experimental import pallas as pl
from jax.experimental.pallas import tpu as pltpu


def slearner_kernel(x_ref, t_ref, w1x_ref, w1t_ref, b1_ref, w2_ref, b2_ref, o_ref):
    x = x_ref[...]                                    # (TILE_B, D) batch-major from HBM
    t_row = t_ref[...]                                # (1, TILE_B) lane-dense

    # First layer, feature-major: (H, D) @ (D, TILE_B).  The torch.cat([x, t])
    # is fused: x-part on the MXU, t-part as an outer-product broadcast on the
    # VPU.  The x transpose runs on the idle XLU.
    h = jnp.dot(w1x_ref[...], x.T, preferred_element_type=jnp.float32)   # (H, TILE_B)
    h = h + w1t_ref[...] * t_row + b1_ref[...]        # (H,1)*(1,TILE_B) + (H,1)
    h = jnp.maximum(h, 0.0)                           # ReLU

    # Second layer (H -> 1) as (1, H) @ (H, TILE_B): result is already a
    # lane-dense row, so the store is an unmasked full-lane vst.
    o = jnp.dot(w2_ref[...], h, preferred_element_type=jnp.float32) + b2_ref[0, 0]
    o_ref[...] = o.astype(o_ref.dtype)                # (1, TILE_B)


def slearner_forward(x, t, w1, b1, w2, b2, *, tile_b=4096):
    B, D = x.shape
    hidden = w1.shape[1]

    # Feature-major views of the (tiny) parameters; no copies of x / t needed.
    w1x_t = w1[:D, :].T                               # (H, D)
    w1t_c = w1[D:D + 1, :].T                          # (H, 1)
    b1_c = b1.reshape(hidden, 1)                      # (H, 1)
    w2_r = w2.reshape(1, hidden)                      # (1, H)
    b2_s = b2.reshape(1, 1)                           # scalar, lives in SMEM

    # t as a lane-dense row (contiguous reshape, free).
    t_row = t.reshape(1, B)

    # Cap the tile at the batch for small B (demo case); large B uses the full
    # roofline-friendly tile (multiple of 128 lanes -> dense blocks + partial
    # tail block instead of a wrapper pad copy).
    tile = tile_b if B >= tile_b else B
    num_tiles = pl.cdiv(B, tile)                      # >= 2 on v7x for large B

    cost = pl.CostEstimate(
        flops=2 * B * D * hidden + 2 * B * hidden + 4 * B * hidden,
        transcendentals=0,
        bytes_accessed=4 * (B * D + B + B)            # x, t, out
        + 4 * ((D + 1) * hidden + 2 * hidden + 1),    # weights/biases
    )

    out = pl.pallas_call(
        slearner_kernel,
        out_shape=jax.ShapeDtypeStruct((1, B), jnp.float32),
        grid=(num_tiles,),
        in_specs=[
            pl.BlockSpec((tile, D), lambda i: (i, 0)),          # x: tiled over batch
            pl.BlockSpec((1, tile), lambda i: (0, i)),          # t: lane-dense row
            pl.BlockSpec((hidden, D), lambda i: (0, 0)),        # w1_x^T: resident
            pl.BlockSpec((hidden, 1), lambda i: (0, 0)),        # w1_t col: resident
            pl.BlockSpec((hidden, 1), lambda i: (0, 0)),        # b1 col: resident
            pl.BlockSpec((1, hidden), lambda i: (0, 0)),        # w2 row: resident
            pl.BlockSpec(memory_space=pltpu.MemorySpace.SMEM),  # b2 scalar
        ],
        out_specs=pl.BlockSpec((1, tile), lambda i: (0, i)),    # lane-dense output row
        compiler_params=pltpu.CompilerParams(
            dimension_semantics=("parallel",),        # shard batch tiles across TCs
            vmem_limit_bytes=32 * 1024 * 1024,        # safe on v5e/v6e/v7x, >> footprint
        ),
        cost_estimate=cost,
    )(x, t_row, w1x_t, w1t_c, b1_c, w2_r, b2_s)

    return out.reshape(B, 1)


def init_params(key, input_dim, hidden=32):
    # Deterministic init mimicking PyTorch nn.Linear default (U[-1/sqrt(fan_in), +]).
    k1, k2, k3, k4 = jax.random.split(key, 4)
    fan1 = input_dim + 1
    bound1 = 1.0 / jnp.sqrt(fan1)
    w1 = jax.random.uniform(k1, (fan1, hidden), jnp.float32, -bound1, bound1)
    b1 = jax.random.uniform(k2, (1, hidden), jnp.float32, -bound1, bound1)
    bound2 = 1.0 / jnp.sqrt(hidden)
    w2 = jax.random.uniform(k3, (hidden, 1), jnp.float32, -bound2, bound2)
    b2 = jax.random.uniform(k4, (1, 1), jnp.float32, -bound2, bound2)
    return w1, b1, w2, b2


if __name__ == "__main__":
    key = jax.random.PRNGKey(0)
    kx, kt, kp = jax.random.split(key, 3)

    B, D = 8, 16                      # batch=8, input_dim=16
    x = jax.random.normal(kx, (B, D), jnp.float32)
    t = (jax.random.uniform(kt, (B, 1)) > 0.5).astype(jnp.float32)   # treatment flag

    w1, b1, w2, b2 = init_params(kp, D)

    out = slearner_forward(x, t, w1, b1, w2, b2)
    out = jax.block_until_ready(out)

    # Reference check in plain JAX (same math as the PyTorch module).
    xt = jnp.concatenate([x, t], axis=1)
    ref = jnp.maximum(xt @ w1 + b1, 0.0) @ w2 + b2
    assert out.shape == (B, 1)
    assert jnp.allclose(out, ref, atol=1e-5, rtol=1e-5)

    print("KERNEL_OK")
</pallas_src>

<mosaic_0001>
module attributes {stable_mosaic.version = 11 : i64} {
  func.func @slearner_kernel(%arg0: i32, %arg1: memref<8x16xf32, #tpu.memory_space<vmem>>, %arg2: memref<1x8xf32, #tpu.memory_space<vmem>>, %arg3: memref<32x16xf32, #tpu.memory_space<vmem>>, %arg4: memref<32x1xf32, #tpu.memory_space<vmem>>, %arg5: memref<32x1xf32, #tpu.memory_space<vmem>>, %arg6: memref<1x32xf32, #tpu.memory_space<vmem>>, %arg7: memref<1x1xf32, #tpu.memory_space<smem>>, %arg8: memref<1x8xf32, #tpu.memory_space<vmem>>) attributes {dimension_semantics = [#tpu.dimension_semantics<parallel>], iteration_bounds = array<i64: 1>, scalar_prefetch = 0 : i64, scratch_operands = 0 : i64, tpu.core_type = #tpu.core_type<tc>, window_params = [{transform_indices = @transform_0, window_bounds = array<i64: 8, 16>}, {transform_indices = @transform_1, window_bounds = array<i64: 1, 8>}, {pipeline_mode = #tpu.pipeline_mode<synchronous>, transform_indices = @transform_2, window_bounds = array<i64: 32, 16>}, {pipeline_mode = #tpu.pipeline_mode<synchronous>, transform_indices = @transform_3, window_bounds = array<i64: 32, 1>}, {pipeline_mode = #tpu.pipeline_mode<synchronous>, transform_indices = @transform_4, window_bounds = array<i64: 32, 1>}, {pipeline_mode = #tpu.pipeline_mode<synchronous>, transform_indices = @transform_5, window_bounds = array<i64: 1, 32>}, {transform_indices = @transform_6, window_bounds = array<i64: 1, 1>}, {transform_indices = @transform_7, window_bounds = array<i64: 1, 8>}]} {
    %c0 = arith.constant 0 : index
    %c0_0 = arith.constant 0 : index
    %0 = vector.load %arg1[%c0, %c0_0] : memref<8x16xf32, #tpu.memory_space<vmem>>, vector<8x16xf32>
    %c0_1 = arith.constant 0 : index
    %c0_2 = arith.constant 0 : index
    %1 = vector.load %arg2[%c0_1, %c0_2] : memref<1x8xf32, #tpu.memory_space<vmem>>, vector<1x8xf32>
    %c0_3 = arith.constant 0 : index
    %c0_4 = arith.constant 0 : index
    %2 = vector.load %arg3[%c0_3, %c0_4] : memref<32x16xf32, #tpu.memory_space<vmem>>, vector<32x16xf32>
    %3 = tpu.transpose %0, [1, 0] : vector<8x16xf32> -> vector<16x8xf32>
    %cst = arith.constant dense<0.000000e+00> : vector<32x8xf32>
    %4 = tpu.matmul %2, %3, %cst {dimension_numbers = #tpu.dot_dimension_numbers<[1], [0], [0], [1], [0, 0, 1, 1], [], []>} : vector<32x16xf32>, vector<16x8xf32>, vector<32x8xf32> -> vector<32x8xf32>
    %c0_5 = arith.constant 0 : index
    %c0_6 = arith.constant 0 : index
    %5 = vector.load %arg4[%c0_5, %c0_6] : memref<32x1xf32, #tpu.memory_space<vmem>>, vector<32x1xf32>
    %6 = vector.broadcast %5 : vector<32x1xf32> to vector<32x8xf32>
    %7 = vector.broadcast %1 : vector<1x8xf32> to vector<32x8xf32>
    %8 = arith.mulf %6, %7 : vector<32x8xf32>
    %9 = arith.addf %4, %8 : vector<32x8xf32>
    %c0_7 = arith.constant 0 : index
    %c0_8 = arith.constant 0 : index
    %10 = vector.load %arg5[%c0_7, %c0_8] : memref<32x1xf32, #tpu.memory_space<vmem>>, vector<32x1xf32>
    %11 = vector.broadcast %10 : vector<32x1xf32> to vector<32x8xf32>
    %12 = arith.addf %9, %11 : vector<32x8xf32>
    %cst_9 = arith.constant 0.000000e+00 : f32
    %13 = vector.broadcast %cst_9 : f32 to vector<32x8xf32>
    %14 = arith.maximumf %12, %13 : vector<32x8xf32>
    %c0_10 = arith.constant 0 : index
    %c0_11 = arith.constant 0 : index
    %15 = vector.load %arg6[%c0_10, %c0_11] : memref<1x32xf32, #tpu.memory_space<vmem>>, vector<1x32xf32>
    %cst_12 = arith.constant dense<0.000000e+00> : vector<1x8xf32>
    %16 = tpu.matmul %15, %14, %cst_12 {dimension_numbers = #tpu.dot_dimension_numbers<[1], [0], [0], [1], [0, 0, 1, 1], [], []>} : vector<1x32xf32>, vector<32x8xf32>, vector<1x8xf32> -> vector<1x8xf32>
    %c0_13 = arith.constant 0 : index
    %c0_14 = arith.constant 0 : index
    %17 = memref.load %arg7[%c0_13, %c0_14] : memref<1x1xf32, #tpu.memory_space<smem>>
    %18 = vector.broadcast %17 : f32 to vector<1x8xf32>
    %19 = arith.addf %16, %18 : vector<1x8xf32>
    %c0_15 = arith.constant 0 : index
    %c0_16 = arith.constant 0 : index
    %20 = vector.load %arg8[%c0_15, %c0_16] : memref<1x8xf32, #tpu.memory_space<vmem>>, vector<1x8xf32>
    tpu.vector_store %arg8[%c0_15, %c0_16], %19 {strides = array<i32>} : memref<1x8xf32, #tpu.memory_space<vmem>>, vector<1x8xf32>,
    return
  }
  func.func @transform_0(%arg0: i32) -> (i32, i32) {
    %c0_i32 = arith.constant 0 : i32
    %c0_i32_0 = arith.constant 0 : i32
    return %arg0, %c0_i32 : i32, i32
  }
  func.func @transform_1(%arg0: i32) -> (i32, i32) {
    %c0_i32 = arith.constant 0 : i32
    %c0_i32_0 = arith.constant 0 : i32
    return %c0_i32, %arg0 : i32, i32
  }
  func.func @transform_2(%arg0: i32) -> (i32, i32) {
    %c0_i32 = arith.constant 0 : i32
    %c0_i32_0 = arith.constant 0 : i32
    %c0_i32_1 = arith.constant 0 : i32
    return %c0_i32, %c0_i32_0 : i32, i32
  }
  func.func @transform_3(%arg0: i32) -> (i32, i32) {
    %c0_i32 = arith.constant 0 : i32
    %c0_i32_0 = arith.constant 0 : i32
    %c0_i32_1 = arith.constant 0 : i32
    return %c0_i32, %c0_i32_0 : i32, i32
  }
  func.func @transform_4(%arg0: i32) -> (i32, i32) {
    %c0_i32 = arith.constant 0 : i32
    %c0_i32_0 = arith.constant 0 : i32
    %c0_i32_1 = arith.constant 0 : i32
    return %c0_i32, %c0_i32_0 : i32, i32
  }
  func.func @transform_5(%arg0: i32) -> (i32, i32) {
    %c0_i32 = arith.constant 0 : i32
    %c0_i32_0 = arith.constant 0 : i32
    %c0_i32_1 = arith.constant 0 : i32
    return %c0_i32, %c0_i32_0 : i32, i32
  }
  func.func @transform_6(%arg0: i32) -> (i32, i32) {
    %c0_i32 = arith.constant 0 : i32
    %c0_i32_0 = arith.constant 0 : i32
    %c0_i32_1 = arith.constant 0 : i32
    return %c0_i32, %c0_i32_0 : i32, i32
  }
  func.func @transform_7(%arg0: i32) -> (i32, i32) {
    %c0_i32 = arith.constant 0 : i32
    %c0_i32_0 = arith.constant 0 : i32
    return %c0_i32, %arg0 : i32, i32
  }
}

</mosaic_0001>

<bundles_post_ra>
// kernel: tpu_custom_call.1
= control target key start
LH: loop header
LB: loop body
LE: loop exit
PB: predicated region body
PF: predicated region fallthrough
CT: control target
= control target key end

     0   :  { %vm68_vm0 = vcmask 130048   ;;  %v367_v4 = vmov 0   ;;  %s478_s0 = inlined_call_operand.vmem [shape: f32[8,16], index: 0, kind: input, shape index: {}]   ;;  %s479_s1 = inlined_call_operand.vmem [shape: f32[1,8], index: 1, kind: input, shape index: {}]   ;;  %s480_s2 = inlined_call_operand.vmem [shape: f32[32,16], index: 2, kind: input, shape index: {}]   ;;  %s481_s3 = inlined_call_operand.vmem [shape: f32[32,1], index: 3, kind: input, shape index: {}]   ;;  %s482_s4 = inlined_call_operand.vmem [shape: f32[32,1], index: 4, kind: input, shape index: {}]   ;;  %s483_s5 = inlined_call_operand.vmem [shape: f32[1,32], index: 5, kind: input, shape index: {}]   ;;  %s484_s6 = inlined_call_operand.<no memory space> [shape: f32[1,1], index: 6, kind: input, shape index: {}]   ;;  %s485_s7 = inlined_call_operand.hbm [shape: f32[1,8], index: 7, kind: output, shape index: {}]  }
   0x1   :  { %v28_v0 = vld [vmem:[%s478_s0] sm:$0xff]  ;;  %v36_v2 = vld [vmem:[%s481_s3 + $0x10] sm:$0xff]  ;;  %v31_v3 = vld [vmem:[%s480_s2 + $0x8] sm:$0xff]  ;;  %342 = vset.pattern.permute.xlu1 %v367_v4  ;;  %341 = vset.pattern.permute.xlu0 %v367_v4 }
   0x2   :  { %v30_v1 = vld [vmem:[%s480_s2] sm:$0xff]  ;;  %311 = vmatprep.subr.msk.mxu0 %vm68_vm0, %v28_v0  ;;  %v32_v6 = vld [vmem:[%s480_s2 + $0x10] sm:$0xff]  ;;  %50 = vperm.xlu1 %342, %v36_v2   ;;  %v37_v7 = vld [vmem:[%s481_s3 + $0x18] sm:$0xff] }
   0x3   :  { %313 = vmatprep.mubr.msk.f32.mxu0 %vm68_vm0, %v30_v1  ;;  %312 = vmatpush3.xpose.msk.msra.mxu0 %vm68_vm0, %v28_v0  ;;  %v34_v5 = vld [vmem:[%s481_s3] sm:$0xff] }
   0x4   :  { %40 = vperm.xlu0 %341, %v34_v5  }
   0x5   :  { %13 = vsyncpa [#allocation4], 0  ;;  %v35_v8 = vld [vmem:[%s481_s3 + $0x8] sm:$0xff]  ;;  %v33_v9 = vld [vmem:[%s480_s2 + $0x18] sm:$0xff]  ;;  %v368_v14 = vmov 0.0|0.0   ;;  %vm369_vm1 = vmmov 0   ;;  %v203_v48 = vstv %s484_s6 }
   0x6   :  { %314 = vmatmul.mubr.msk.f32.vlgmr.msra.gmra.mrb[0].mxu0 %vm68_vm0, %v31_v3  ;;  %55 = vperm.xlu1 %342, %v37_v7   ;;  %v170_v10 = vld [vmem:[%s482_s4 + $0x8] sm:$0xff]  ;;  %v169_v11 = vld [vmem:[%s482_s4] sm:$0xff]  ;;  %v172_v12 = vld [vmem:[%s482_s4 + $0x18] sm:$0xff]  ;;  %v370_v15 = vmov 0.0   ;;  %vm204_vm2 = vcmask 261120   ;;  %s371_s28 = smov [#allocation3]  }
   0x7   :  { %316 = vmatprep.mubr.msk.f32.mxu0 %vm68_vm0, %v32_v6  ;;  %v171_v13 = vld [vmem:[%s482_s4 + $0x10] sm:$0xff]  ;;  %330 = vmatprep.subr.bf16.mxu1 %v368_v14  ;;  %v294_v20 = vld [vmem:[%s479_s1] ss:$0 sm:$0xff]  ;;  %s286_s29 = sshll.u32 %s371_s28, 4  ;;  %vm278_vm3 = vcmask 57344   ;;  %s287_s29 = int_to_ptr.vmem [resolvable:$true] %s286_s29 }
   0x8   :  { %45 = vperm.xlu0 %341, %v35_v8   ;;  %327 = vmatprep.mubr.msk.f32.mxu1 %vm369_vm1, %v370_v15  ;;  %v201_v47 = vld [vmem:[%s483_s5] sm:$0x1]  ;;  %s343_s30 = scalar_lea.vmem %s287_s29, 16  ;;  %s347_s8 = scalar_lea.vmem %s287_s29, 32 }
   0x9   :  { %p344_p0 = scmp.ne.s32.totalorder %s287_s29, %s343_s30  ;;  %p348_p1 = scmp.lt.s32.totalorder %s287_s29, %s287_s29 }
   0xa   :  { %317 = vmatmul.mubr.msk.f32.gmra.mrb[2].mxu0 %vm68_vm0, %v33_v9  ;;  %180 = vperm.xlu1 %342, %v170_v10   ;;  %p349_p2 = scmp.lt.s32.totalorder %s347_s8, %s343_s30 }
   0xc   :  { %175 = vperm.xlu0 %341, %v169_v11   ;;  %p350_p3 = por %p349_p2, %p348_p1 }
   0xe   :  { %190 = vperm.xlu1 %342, %v172_v12   ;;  %p351_p4 = pnand %p350_p3, %p344_p0 }
  0x10   :  { %185 = vperm.xlu0 %341, %v171_v13  }
  0x81   :  { %v51_v16 = vpop.permute.xlu1 %50 }
  0x82   :  { %v66_v31 = vmul.f32 %v294_v20, %v51_v16 }
  0x83   :  { %v41_v17 = vpop.permute.xlu0 %40 }
  0x84   :  { %v64_v22 = vmul.f32 %v294_v20, %v41_v17 }
  0x85   :  { %v56_v18 = vpop.permute.xlu1 %55 }
  0x86   :  { %v67_v29 = vmul.f32 %v294_v20, %v56_v18 }
  0x87   :  { %v46_v19 = vpop.permute.xlu0 %45 }
  0x88   :  { %v65_v21 = vmul.f32 %v294_v20, %v46_v19 }
  0x89   :  { %v181_v23 = vpop.permute.xlu1 %180 }
  0x8b   :  { %v176_v25 = vpop.permute.xlu0 %175 }
  0x8d   :  { %v191_v37 = vpop.permute.xlu1 %190 }
  0x8f   :  { %v186_v40 = vpop.permute.xlu0 %185 }
  0xd9   :  { %v315_v24 = vpop.f32.mrb[0].mxu0 }
  0xda   :  { %v156_v26 = vadd.f32 %v315_v24, %v65_v21  ;;  %v150_v27 = vpop.f32.mrb[1].mxu0 }
  0xdb   :  { %v151_v28 = vadd.f32 %v150_v27, %v64_v22 }
  0xdc   :  { %v194_v30 = vadd.f32 %v181_v23, %v156_v26 }
  0xdd   :  { %v193_v32 = vadd.f32 %v176_v25, %v151_v28  ;;  %v318_v33 = vpop.f32.mrb[2].mxu0 }
  0xde   :  { %v198_v34 = vmax.f32 %v194_v30, 0.0  ;;  %v166_v35 = vadd.f32 %v318_v33, %v67_v29  ;;  %v160_v36 = vpop.f32.mrb[3].mxu0 }
  0xdf   :  { %v197_v38 = vmax.f32 %v193_v32, 0.0  ;;  %v161_v39 = vadd.f32 %v160_v36, %v66_v31 }
  0xe0   :  { %v196_v41 = vadd.f32 %v191_v37, %v166_v35 }
  0xe1   :  { %v195_v42 = vadd.f32 %v186_v40, %v161_v39  ;;  %v331_v43 = vpack.c.bf16 %v198_v34, %v197_v38 }
  0xe2   :  { %v200_v44 = vmax.f32 %v196_v41, 0.0 }
  0xe3   :  { %v199_v45 = vmax.f32 %v195_v42, 0.0  ;;  %332 = vmatpush3.bf16.msra.mxu1 %v331_v43 }
  0xe4   :  { %333 = vmatprep.subr.bf16.mxu1 %v368_v14 }
  0xe5   :  { %v334_v46 = vpack.c.bf16 %v200_v44, %v199_v45 }
  0xe7   :  { %335 = vmatpush3.bf16.msra.mxu1 %v334_v46 }
  0xea   :  { %328 = vmatmul.mubr.msk.f32.vlgmr.msra.gmra.mrb[0].mxu1 %vm204_vm2, %v201_v47 }
 0x1bd   :  { %v274_v49 = vpop.f32.mrb[0].mxu1 }
 0x1be   :  { %v275_v50 = vadd.f32 %v274_v49, %v203_v48  ;;  %v329_v51 = vpop.f32.mrb[1].mxu1 }
 0x1c0   :  { %279 = vst.msk [vmem:[#allocation3] sm:$0x1] %vm278_vm3, %v275_v50 }
 0x1c1   :  { %354 = shalt.err (!%p351_p4)
}
 0x1c2   :  { %s355_s6 = scalar_lea.hbm %s485_s7, 16 }
 0x1c3   :  { %p356_p5 = scmp.ne.s32.totalorder %s485_s7, %s355_s6  ;;  %p359_p6 = scmp.lt.u32.totalorder %s355_s6, %s485_s7 }
 0x1c5   :  { %p361_p7 = pnand %p359_p6, %p356_p5 }
 0x1c7   :  { %364 = shalt.err (!%p361_p7)
}
 0x1c8   :  { %289 = dma.vmem_to_hbm [thread:$0]  %s287_s29, 16, %s485_s7, [#allocation4]  }
 0x1c9   :  { %365 = dma.done.wait [#allocation4], 16  }
 0x1ca   :  { %366 = vsyncadd [#allocation4], 4294967280 }
 0x1cb   :  { %293 = vsyncpa [#allocation4], 1 }

</bundles_post_ra>
